<compile_context>
chip_gen: v7x
topology: tpu7x:2x2x1
jax: 0.10.0
libtpu: 0.0.40
codegen_flags: <defaults>
</compile_context>

<pallas_src>
import functools

import jax
import jax.numpy as jnp
from jax.experimental import pallas as pl
from jax.experimental.pallas import tpu as pltpu

_VMEM_LIMIT = 48 * 1024 * 1024          # safe on v7x (64 MiB physical VMEM)
_RESIDENT_X_BYTES = 12 * 1024 * 1024    # X kept VMEM-resident below this size


def _round_up(x, m):
    return (x + m - 1) // m * m


def _pad_n(n):
    """Padded node count so the chosen tiles divide it exactly."""
    if n <= 512:
        return _round_up(n, 128)
    return _round_up(n, 1024)


def _choose_tiles(n_pad):
    if n_pad <= 512:
        return n_pad, n_pad
    for tm in (512, 256, 128):
        if n_pad % tm == 0:
            break
    for tk in (1024, 512, 256, 128):
        if n_pad % tk == 0:
            break
    return tm, tk


# ----------------------- one GCN hop: A @ X (+ running sum) -----------------
def _spmm_resident_kernel(a_ref, x_ref, s_ref, o_ref, sum_ref, acc_ref):
    """X is fully VMEM-resident; A streams (tm, tk) tiles over the K grid axis.
    Outputs: bf16 next-hop input and f32 running hop-sum (s + A@X)."""
    k = pl.program_id(1)

    @pl.when(k == 0)
    def _():
        acc_ref[...] = jnp.zeros_like(acc_ref)

    tk = a_ref.shape[1]
    start = pl.multiple_of(k * tk, tk)
    acc_ref[...] += jnp.dot(a_ref[...], x_ref[pl.ds(start, tk), :],
                            preferred_element_type=jnp.float32)

    @pl.when(k == pl.num_programs(1) - 1)
    def _():
        o_ref[...] = acc_ref[...].astype(o_ref.dtype)      # bf16 next-hop input
        sum_ref[...] = s_ref[...] + acc_ref[...]            # f32 running sum


def _spmm_stream_kernel(a_ref, x_ref, s_ref, o_ref, sum_ref, acc_ref):
    """Fallback when X does not fit VMEM: stream (tk, d_pad) X blocks."""
    k = pl.program_id(1)

    @pl.when(k == 0)
    def _():
        acc_ref[...] = jnp.zeros_like(acc_ref)

    acc_ref[...] += jnp.dot(a_ref[...], x_ref[...],
                            preferred_element_type=jnp.float32)

    @pl.when(k == pl.num_programs(1) - 1)
    def _():
        o_ref[...] = acc_ref[...].astype(o_ref.dtype)
        sum_ref[...] = s_ref[...] + acc_ref[...]


def _hop_matmul(adj_bf, x_bf, sum_f32, *, tm, tk, resident):
    n_pad, d_pad = sum_f32.shape
    grid = (n_pad // tm, n_pad // tk)
    if resident:
        kernel = _spmm_resident_kernel
        x_spec = pl.BlockSpec((n_pad, d_pad), lambda i, k: (0, 0))   # resident
    else:
        kernel = _spmm_stream_kernel
        x_spec = pl.BlockSpec((tk, d_pad), lambda i, k: (k, 0))

    return pl.pallas_call(
        kernel,
        out_shape=(jax.ShapeDtypeStruct((n_pad, d_pad), jnp.bfloat16),
                   jax.ShapeDtypeStruct((n_pad, d_pad), jnp.float32)),
        grid_spec=pltpu.PrefetchScalarGridSpec(
            num_scalar_prefetch=0,
            grid=grid,
            in_specs=[
                pl.BlockSpec((tm, tk), lambda i, k: (i, k)),     # adjacency
                x_spec,                                          # hop input
                pl.BlockSpec((tm, d_pad), lambda i, k: (i, 0)),  # running sum in
            ],
            out_specs=(
                pl.BlockSpec((tm, d_pad), lambda i, k: (i, 0)),  # bf16 next hop
                pl.BlockSpec((tm, d_pad), lambda i, k: (i, 0)),  # f32 sum out
            ),
            scratch_shapes=[pltpu.VMEM((tm, d_pad), jnp.float32)],
        ),
        compiler_params=pltpu.CompilerParams(
            dimension_semantics=("parallel", "arbitrary"),
            vmem_limit_bytes=_VMEM_LIMIT,
        ),
    )(adj_bf, x_bf, sum_f32)


def gcn_propagate_mean(adj_bf, emb0, n_hops):
    """Returns the hop-mean embedding (N_pad, D_pad) f32 (pool='mean')."""
    n_pad, d_pad = emb0.shape
    if n_hops == 0:
        return emb0
    tm, tk = _choose_tiles(n_pad)
    resident = n_pad * d_pad * 2 <= _RESIDENT_X_BYTES

    sum_f32 = emb0                              # hop-0 contribution
    x_bf = emb0.astype(jnp.bfloat16)
    for _ in range(n_hops):
        x_bf, sum_f32 = _hop_matmul(adj_bf, x_bf, sum_f32,
                                    tm=tm, tk=tk, resident=resident)
    return sum_f32 * (1.0 / (n_hops + 1))


# ------------------------------- BPR loss ----------------------------------
def _bpr_kernel(u_ref, p_ref, n_ref, u0_ref, p0_ref, n0_ref, mf_ref, reg_ref):
    """One (TB, D) batch tile -> per-tile partial mf / reg sums."""
    u = u_ref[...]                                             # (TB, D)
    p = p_ref[...]
    pos_s = jnp.sum(u * p, axis=-1, keepdims=True)             # (TB, 1)

    exp_sum = jnp.zeros_like(pos_s)
    reg_rows = (jnp.sum(u0_ref[...] * u0_ref[...], axis=-1, keepdims=True)
                + jnp.sum(p0_ref[...] * p0_ref[...], axis=-1, keepdims=True))

    K = n_ref.shape[0]
    for k in range(K):                                         # static unroll
        nk = n_ref[k]                                          # (TB, D)
        neg_s = jnp.sum(u * nk, axis=-1, keepdims=True)
        # Same formula as torch: log(1 + sum_k exp(neg - pos)); unstabilized
        # on purpose to keep the forward-pass semantics identical.
        exp_sum = exp_sum + jnp.exp(neg_s - pos_s)
        n0k = n0_ref[k]
        reg_rows = reg_rows + jnp.sum(n0k * n0k, axis=-1, keepdims=True)

    mf_ref[...] = jnp.sum(jnp.log(1.0 + exp_sum)).reshape(1, 1, 1)
    reg_ref[...] = jnp.sum(reg_rows).reshape(1, 1, 1)


def bpr_loss(mean_emb, emb0, users, pos_items, neg_items, *, n_users, K):
    """mean_emb / emb0: (N_pad, D_pad) f32.  Returns (mf_loss, regularize)."""
    d_pad = mean_emb.shape[1]
    batch = users.shape[0]

    users = users.astype(jnp.int32)
    pos = (pos_items + n_users).astype(jnp.int32)
    neg = (neg_items[:, :K] + n_users).astype(jnp.int32)       # (B, K)

    # Pre-gather rows in the wrapper (one pass), then batch-tile the math.
    u_m = jnp.take(mean_emb, users, axis=0)                    # (B, D)
    p_m = jnp.take(mean_emb, pos, axis=0)
    n_m = jnp.take(mean_emb, neg.reshape(-1), axis=0).reshape(batch, K, d_pad)
    u0 = jnp.take(emb0, users, axis=0)                         # hop-0 rows (reg)
    p0 = jnp.take(emb0, pos, axis=0)
    n0 = jnp.take(emb0, neg.reshape(-1), axis=0).reshape(batch, K, d_pad)

    tb = 256 if batch >= 256 else _round_up(batch, 8)
    b_pad = _round_up(batch, tb)
    pad_b = b_pad - batch

    def padb(x):
        return jnp.pad(x, ((0, pad_b),) + ((0, 0),) * (x.ndim - 1))

    u_m, p_m, u0, p0 = padb(u_m), padb(p_m), padb(u0), padb(p0)
    n_m = jnp.transpose(padb(n_m), (1, 0, 2))                  # (K, B_pad, D)
    n0 = jnp.transpose(padb(n0), (1, 0, 2))
    n_tiles = b_pad // tb

    row_spec = pl.BlockSpec((tb, d_pad), lambda b: (b, 0))
    neg_spec = pl.BlockSpec((K, tb, d_pad), lambda b: (0, b, 0))
    out_spec = pl.BlockSpec((1, 1, 1), lambda b: (b, 0, 0))

    mf_parts, reg_parts = pl.pallas_call(
        _bpr_kernel,
        out_shape=(jax.ShapeDtypeStruct((n_tiles, 1, 1), jnp.float32),
                   jax.ShapeDtypeStruct((n_tiles, 1, 1), jnp.float32)),
        grid_spec=pltpu.PrefetchScalarGridSpec(
            num_scalar_prefetch=0,
            grid=(n_tiles,),
            in_specs=[row_spec, row_spec, neg_spec, row_spec, row_spec, neg_spec],
            out_specs=(out_spec, out_spec),
        ),
        compiler_params=pltpu.CompilerParams(
            dimension_semantics=("parallel",),
            vmem_limit_bytes=32 * 1024 * 1024,
        ),
    )(u_m, p_m, n_m, u0, p0, n0)

    # Zero-padded samples contribute exactly log(1 + K) each (exp(0-0) per k)
    # and 0 to reg; subtract the exact correction instead of masking in-kernel.
    mf = (jnp.sum(mf_parts) - pad_b * jnp.log(1.0 + K)) / batch
    reg = 0.5 * jnp.sum(reg_parts)
    return mf, reg


# --------------------------- LightGCN.forward -------------------------------
@functools.partial(jax.jit, static_argnames=("n_users", "n_hops", "K", "decay"))
def lightgcn_forward(user_embed, item_embed, adj_bf, users, pos_items, neg_items,
                     *, n_users, n_hops, K, decay):
    """adj_bf: PRE-padded (N_pad, N_pad) bf16 normalized adjacency (built once
    outside the per-step jit)."""
    all_embed = jnp.concatenate([user_embed, item_embed], axis=0)   # (N, D) f32
    n, d = all_embed.shape
    n_pad = adj_bf.shape[0]
    d_pad = _round_up(d, 128)
    emb0 = jnp.pad(all_embed, ((0, n_pad - n), (0, d_pad - d)))     # exact

    # GCN propagation; only the hop-mean is needed (pool='mean'), hop-0 = emb0.
    mean_emb = gcn_propagate_mean(adj_bf, emb0, n_hops)

    # ns == 'rns': random negative sampling — first K candidate columns.
    mf_loss, regularize = bpr_loss(mean_emb, emb0, users, pos_items, neg_items,
                                   n_users=n_users, K=K)

    batch_size = users.shape[0]
    emb_loss = decay * regularize / batch_size
    return mf_loss + emb_loss, mf_loss, emb_loss


# ----------------------------- pure-JAX reference ---------------------------
def reference_forward(user_embed, item_embed, adj, users, pos_items, neg_items,
                      n_users, n_hops, K, decay):
    # Mirrors the torch module (and the kernel numerics: bf16 MXU, f32 acc).
    all_embed = jnp.concatenate([user_embed, item_embed], axis=0)
    adj_bf = adj.astype(jnp.bfloat16)
    embs = [all_embed]
    agg = all_embed
    for _ in range(n_hops):
        agg = jnp.dot(adj_bf, agg.astype(jnp.bfloat16),
                      preferred_element_type=jnp.float32)
        embs.append(agg)
    embs = jnp.stack(embs, axis=1)                       # (N, H+1, D) torch conv.
    user_g, item_g = embs[:n_users], embs[n_users:]
    neg_g = item_g[neg_items[:, :K]]                     # (B, K, H+1, D)
    u_b, p_b = user_g[users], item_g[pos_items]
    u_e, p_e, n_e = u_b.mean(1), p_b.mean(1), neg_g.mean(2)
    pos_s = (u_e * p_e).sum(-1)
    neg_s = (u_e[:, None, :] * n_e).sum(-1)
    mf = jnp.mean(jnp.log(1.0 + jnp.exp(neg_s - pos_s[:, None]).sum(1)))
    reg = 0.5 * (jnp.sum(u_b[:, 0] ** 2) + jnp.sum(p_b[:, 0] ** 2)
                 + jnp.sum(neg_g[:, :, 0] ** 2))
    emb = decay * reg / users.shape[0]
    return mf + emb, mf, emb


# ---------------------------------- main -------------------------------------
if __name__ == "__main__":
    n_users, n_items, emb_size, n_hops = 24, 40, 64, 2
    batch, n_negs, K = 8, 4, 2
    decay = 1e-4
    N = n_users + n_items

    key = jax.random.PRNGKey(0)
    k1, k2, k3, k4, k5, k6 = jax.random.split(key, 6)

    # xavier_uniform init (deterministic, in-script)
    bu = (6.0 / (n_users + emb_size)) ** 0.5
    bi = (6.0 / (n_items + emb_size)) ** 0.5
    user_embed = jax.random.uniform(k1, (n_users, emb_size), jnp.float32, -bu, bu)
    item_embed = jax.random.uniform(k2, (n_items, emb_size), jnp.float32, -bi, bi)

    # deterministic symmetric-normalized bipartite adjacency (dense)
    R = (jax.random.uniform(k3, (n_users, n_items)) < 0.15).astype(jnp.float32)
    adj = jnp.zeros((N, N), jnp.float32)
    adj = adj.at[:n_users, n_users:].set(R)
    adj = adj.at[n_users:, :n_users].set(R.T)
    deg = jnp.sum(adj, axis=1)
    d_inv_sqrt = jnp.where(deg > 0, 1.0 / jnp.sqrt(deg), 0.0)
    adj = adj * d_inv_sqrt[:, None] * d_inv_sqrt[None, :]

    # Hoisted out of the per-step forward: zero-pad + bf16 cast once.
    n_pad = _pad_n(N)
    adj_bf = jnp.pad(adj, ((0, n_pad - N), (0, n_pad - N))).astype(jnp.bfloat16)

    users = jax.random.randint(k4, (batch,), 0, n_users)
    pos_items = jax.random.randint(k5, (batch,), 0, n_items)
    neg_items = jax.random.randint(k6, (batch, n_negs), 0, n_items)

    total, mf, emb = lightgcn_forward(
        user_embed, item_embed, adj_bf, users, pos_items, neg_items,
        n_users=n_users, n_hops=n_hops, K=K, decay=decay)
    jax.block_until_ready((total, mf, emb))

    ref_total, ref_mf, ref_emb = reference_forward(
        user_embed, item_embed, adj, users, pos_items, neg_items,
        n_users, n_hops, K, decay)

    assert jnp.allclose(total, ref_total, rtol=2e-3, atol=1e-5), (total, ref_total)
    assert jnp.allclose(mf, ref_mf, rtol=2e-3, atol=1e-5), (mf, ref_mf)
    assert jnp.allclose(emb, ref_emb, rtol=2e-3, atol=1e-6), (emb, ref_emb)

    print("KERNEL_OK")
</pallas_src>

<mosaic_0001>
module attributes {stable_mosaic.version = 11 : i64} {
  func.func @_spmm_resident_kernel(%arg0: i32, %arg1: i32, %arg2: memref<128x128xbf16, #tpu.memory_space<vmem>>, %arg3: memref<128x128xbf16, #tpu.memory_space<vmem>>, %arg4: memref<128x128xf32, #tpu.memory_space<vmem>>, %arg5: memref<128x128xbf16, #tpu.memory_space<vmem>>, %arg6: memref<128x128xf32, #tpu.memory_space<vmem>>, %arg7: memref<128x128xf32, #tpu.memory_space<vmem>>) attributes {dimension_semantics = [#tpu.dimension_semantics<parallel>, #tpu.dimension_semantics<arbitrary>], iteration_bounds = array<i64: 1, 1>, scalar_prefetch = 0 : i64, scratch_operands = 1 : i64, tpu.core_type = #tpu.core_type<tc>, window_params = [{transform_indices = @transform_0, window_bounds = array<i64: 128, 128>}, {pipeline_mode = #tpu.pipeline_mode<synchronous>, transform_indices = @transform_1, window_bounds = array<i64: 128, 128>}, {transform_indices = @transform_2, window_bounds = array<i64: 128, 128>}, {transform_indices = @transform_3, window_bounds = array<i64: 128, 128>}, {transform_indices = @transform_4, window_bounds = array<i64: 128, 128>}]} {
    %c0_i32 = arith.constant 0 : i32
    %0 = arith.cmpi eq, %arg1, %c0_i32 : i32
    %1 = arith.extui %0 : i1 to i32
    %c0_i32_0 = arith.constant 0 : i32
    %2 = arith.cmpi ne, %1, %c0_i32_0 : i32
    scf.if %2 {
      %cst_9 = arith.constant 0.000000e+00 : f32
      %15 = vector.broadcast %cst_9 : f32 to vector<128x128xf32>
      %c0_10 = arith.constant 0 : index
      %c0_11 = arith.constant 0 : index
      %16 = vector.load %arg7[%c0_10, %c0_11] : memref<128x128xf32, #tpu.memory_space<vmem>>, vector<128x128xf32>
      tpu.vector_store %arg7[%c0_10, %c0_11], %15 {strides = array<i32>} : memref<128x128xf32, #tpu.memory_space<vmem>>, vector<128x128xf32>,
    } else {
    }
    %c128_i32 = arith.constant 128 : i32
    %3 = arith.muli %arg1, %c128_i32 : i32
    %4 = tpu.assume_multiple %3, 128 : i32
    %c0 = arith.constant 0 : index
    %c0_1 = arith.constant 0 : index
    %5 = vector.load %arg7[%c0, %c0_1] : memref<128x128xf32, #tpu.memory_space<vmem>>, vector<128x128xf32>
    %c0_2 = arith.constant 0 : index
    %c0_3 = arith.constant 0 : index
    %6 = vector.load %arg2[%c0_2, %c0_3] : memref<128x128xbf16, #tpu.memory_space<vmem>>, vector<128x128xbf16>
    %7 = arith.index_cast %4 : i32 to index
    %c0_4 = arith.constant 0 : index
    %8 = vector.load %arg3[%7, %c0_4] : memref<128x128xbf16, #tpu.memory_space<vmem>>, vector<128x128xbf16>
    %cst = arith.constant dense<0.000000e+00> : vector<128x128xf32>
    %9 = tpu.matmul %6, %8, %cst {dimension_numbers = #tpu.dot_dimension_numbers<[1], [0], [0], [1], [0, 0, 1, 1], [], []>} : vector<128x128xbf16>, vector<128x128xbf16>, vector<128x128xf32> -> vector<128x128xf32>
    %10 = arith.addf %5, %9 : vector<128x128xf32>
    %c0_5 = arith.constant 0 : index
    %c0_6 = arith.constant 0 : index
    %11 = vector.load %arg7[%c0_5, %c0_6] : memref<128x128xf32, #tpu.memory_space<vmem>>, vector<128x128xf32>
    tpu.vector_store %arg7[%c0_5, %c0_6], %10 {strides = array<i32>} : memref<128x128xf32, #tpu.memory_space<vmem>>, vector<128x128xf32>,
    %c0_i32_7 = arith.constant 0 : i32
    %12 = arith.cmpi eq, %arg1, %c0_i32_7 : i32
    %13 = arith.extui %12 : i1 to i32
    %c0_i32_8 = arith.constant 0 : i32
    %14 = arith.cmpi ne, %13, %c0_i32_8 : i32
    scf.if %14 {
      %c0_9 = arith.constant 0 : index
      %c0_10 = arith.constant 0 : index
      %15 = vector.load %arg7[%c0_9, %c0_10] : memref<128x128xf32, #tpu.memory_space<vmem>>, vector<128x128xf32>
      %16 = arith.truncf %15 : vector<128x128xf32> to vector<128x128xbf16>
      %c0_11 = arith.constant 0 : index
      %c0_12 = arith.constant 0 : index
      %17 = vector.load %arg5[%c0_11, %c0_12] : memref<128x128xbf16, #tpu.memory_space<vmem>>, vector<128x128xbf16>
      tpu.vector_store %arg5[%c0_11, %c0_12], %16 {strides = array<i32>} : memref<128x128xbf16, #tpu.memory_space<vmem>>, vector<128x128xbf16>,
      %c0_13 = arith.constant 0 : index
      %c0_14 = arith.constant 0 : index
      %18 = vector.load %arg4[%c0_13, %c0_14] : memref<128x128xf32, #tpu.memory_space<vmem>>, vector<128x128xf32>
      %c0_15 = arith.constant 0 : index
      %c0_16 = arith.constant 0 : index
      %19 = vector.load %arg7[%c0_15, %c0_16] : memref<128x128xf32, #tpu.memory_space<vmem>>, vector<128x128xf32>
      %20 = arith.addf %18, %19 : vector<128x128xf32>
      %c0_17 = arith.constant 0 : index
      %c0_18 = arith.constant 0 : index
      %21 = vector.load %arg6[%c0_17, %c0_18] : memref<128x128xf32, #tpu.memory_space<vmem>>, vector<128x128xf32>
      tpu.vector_store %arg6[%c0_17, %c0_18], %20 {strides = array<i32>} : memref<128x128xf32, #tpu.memory_space<vmem>>, vector<128x128xf32>,
    } else {
    }
    return
  }
  func.func @transform_0(%arg0: i32, %arg1: i32) -> (i32, i32) {
    %c0_i32 = arith.constant 0 : i32
    return %arg0, %arg1 : i32, i32
  }
  func.func @transform_1(%arg0: i32, %arg1: i32) -> (i32, i32) {
    %c0_i32 = arith.constant 0 : i32
    %c0_i32_0 = arith.constant 0 : i32
    %c0_i32_1 = arith.constant 0 : i32
    return %c0_i32, %c0_i32_0 : i32, i32
  }
  func.func @transform_2(%arg0: i32, %arg1: i32) -> (i32, i32) {
    %c0_i32 = arith.constant 0 : i32
    %c0_i32_0 = arith.constant 0 : i32
    return %arg0, %c0_i32 : i32, i32
  }
  func.func @transform_3(%arg0: i32, %arg1: i32) -> (i32, i32) {
    %c0_i32 = arith.constant 0 : i32
    %c0_i32_0 = arith.constant 0 : i32
    return %arg0, %c0_i32 : i32, i32
  }
  func.func @transform_4(%arg0: i32, %arg1: i32) -> (i32, i32) {
    %c0_i32 = arith.constant 0 : i32
    %c0_i32_0 = arith.constant 0 : i32
    return %arg0, %c0_i32 : i32, i32
  }
}

module attributes {stable_mosaic.version = 11 : i64} {
  func.func @_spmm_resident_kernel(%arg0: i32, %arg1: i32, %arg2: memref<128x128xbf16, #tpu.memory_space<vmem>>, %arg3: memref<128x128xbf16, #tpu.memory_space<vmem>>, %arg4: memref<128x128xf32, #tpu.memory_space<vmem>>, %arg5: memref<128x128xbf16, #tpu.memory_space<vmem>>, %arg6: memref<128x128xf32, #tpu.memory_space<vmem>>, %arg7: memref<128x128xf32, #tpu.memory_space<vmem>>) attributes {dimension_semantics = [#tpu.dimension_semantics<parallel>, #tpu.dimension_semantics<arbitrary>], iteration_bounds = array<i64: 1, 1>, scalar_prefetch = 0 : i64, scratch_operands = 1 : i64, tpu.core_type = #tpu.core_type<tc>, window_params = [{transform_indices = @transform_0, window_bounds = array<i64: 128, 128>}, {pipeline_mode = #tpu.pipeline_mode<synchronous>, transform_indices = @transform_1, window_bounds = array<i64: 128, 128>}, {transform_indices = @transform_2, window_bounds = array<i64: 128, 128>}, {transform_indices = @transform_3, window_bounds = array<i64: 128, 128>}, {transform_indices = @transform_4, window_bounds = array<i64: 128, 128>}]} {
    %c0_i32 = arith.constant 0 : i32
    %0 = arith.cmpi eq, %arg1, %c0_i32 : i32
    %1 = arith.extui %0 : i1 to i32
    %c0_i32_0 = arith.constant 0 : i32
    %2 = arith.cmpi ne, %1, %c0_i32_0 : i32
    scf.if %2 {
      %cst_9 = arith.constant 0.000000e+00 : f32
      %15 = vector.broadcast %cst_9 : f32 to vector<128x128xf32>
      %c0_10 = arith.constant 0 : index
      %c0_11 = arith.constant 0 : index
      %16 = vector.load %arg7[%c0_10, %c0_11] : memref<128x128xf32, #tpu.memory_space<vmem>>, vector<128x128xf32>
      tpu.vector_store %arg7[%c0_10, %c0_11], %15 {strides = array<i32>} : memref<128x128xf32, #tpu.memory_space<vmem>>, vector<128x128xf32>,
    } else {
    }
    %c128_i32 = arith.constant 128 : i32
    %3 = arith.muli %arg1, %c128_i32 : i32
    %4 = tpu.assume_multiple %3, 128 : i32
    %c0 = arith.constant 0 : index
    %c0_1 = arith.constant 0 : index
    %5 = vector.load %arg7[%c0, %c0_1] : memref<128x128xf32, #tpu.memory_space<vmem>>, vector<128x128xf32>
    %c0_2 = arith.constant 0 : index
    %c0_3 = arith.constant 0 : index
    %6 = vector.load %arg2[%c0_2, %c0_3] : memref<128x128xbf16, #tpu.memory_space<vmem>>, vector<128x128xbf16>
    %7 = arith.index_cast %4 : i32 to index
    %c0_4 = arith.constant 0 : index
    %8 = vector.load %arg3[%7, %c0_4] : memref<128x128xbf16, #tpu.memory_space<vmem>>, vector<128x128xbf16>
    %cst = arith.constant dense<0.000000e+00> : vector<128x128xf32>
    %9 = tpu.matmul %6, %8, %cst {dimension_numbers = #tpu.dot_dimension_numbers<[1], [0], [0], [1], [0, 0, 1, 1], [], []>} : vector<128x128xbf16>, vector<128x128xbf16>, vector<128x128xf32> -> vector<128x128xf32>
    %10 = arith.addf %5, %9 : vector<128x128xf32>
    %c0_5 = arith.constant 0 : index
    %c0_6 = arith.constant 0 : index
    %11 = vector.load %arg7[%c0_5, %c0_6] : memref<128x128xf32, #tpu.memory_space<vmem>>, vector<128x128xf32>
    tpu.vector_store %arg7[%c0_5, %c0_6], %10 {strides = array<i32>} : memref<128x128xf32, #tpu.memory_space<vmem>>, vector<128x128xf32>,
    %c0_i32_7 = arith.constant 0 : i32
    %12 = arith.cmpi eq, %arg1, %c0_i32_7 : i32
    %13 = arith.extui %12 : i1 to i32
    %c0_i32_8 = arith.constant 0 : i32
    %14 = arith.cmpi ne, %13, %c0_i32_8 : i32
    scf.if %14 {
      %c0_9 = arith.constant 0 : index
      %c0_10 = arith.constant 0 : index
      %15 = vector.load %arg7[%c0_9, %c0_10] : memref<128x128xf32, #tpu.memory_space<vmem>>, vector<128x128xf32>
      %16 = arith.truncf %15 : vector<128x128xf32> to vector<128x128xbf16>
      %c0_11 = arith.constant 0 : index
      %c0_12 = arith.constant 0 : index
      %17 = vector.load %arg5[%c0_11, %c0_12] : memref<128x128xbf16, #tpu.memory_space<vmem>>, vector<128x128xbf16>
      tpu.vector_store %arg5[%c0_11, %c0_12], %16 {strides = array<i32>} : memref<128x128xbf16, #tpu.memory_space<vmem>>, vector<128x128xbf16>,
      %c0_13 = arith.constant 0 : index
      %c0_14 = arith.constant 0 : index
      %18 = vector.load %arg4[%c0_13, %c0_14] : memref<128x128xf32, #tpu.memory_space<vmem>>, vector<128x128xf32>
      %c0_15 = arith.constant 0 : index
      %c0_16 = arith.constant 0 : index
      %19 = vector.load %arg7[%c0_15, %c0_16] : memref<128x128xf32, #tpu.memory_space<vmem>>, vector<128x128xf32>
      %20 = arith.addf %18, %19 : vector<128x128xf32>
      %c0_17 = arith.constant 0 : index
      %c0_18 = arith.constant 0 : index
      %21 = vector.load %arg6[%c0_17, %c0_18] : memref<128x128xf32, #tpu.memory_space<vmem>>, vector<128x128xf32>
      tpu.vector_store %arg6[%c0_17, %c0_18], %20 {strides = array<i32>} : memref<128x128xf32, #tpu.memory_space<vmem>>, vector<128x128xf32>,
    } else {
    }
    return
  }
  func.func @transform_0(%arg0: i32, %arg1: i32) -> (i32, i32) {
    %c0_i32 = arith.constant 0 : i32
    return %arg0, %arg1 : i32, i32
  }
  func.func @transform_1(%arg0: i32, %arg1: i32) -> (i32, i32) {
    %c0_i32 = arith.constant 0 : i32
    %c0_i32_0 = arith.constant 0 : i32
    %c0_i32_1 = arith.constant 0 : i32
    return %c0_i32, %c0_i32_0 : i32, i32
  }
  func.func @transform_2(%arg0: i32, %arg1: i32) -> (i32, i32) {
    %c0_i32 = arith.constant 0 : i32
    %c0_i32_0 = arith.constant 0 : i32
    return %arg0, %c0_i32 : i32, i32
  }
  func.func @transform_3(%arg0: i32, %arg1: i32) -> (i32, i32) {
    %c0_i32 = arith.constant 0 : i32
    %c0_i32_0 = arith.constant 0 : i32
    return %arg0, %c0_i32 : i32, i32
  }
  func.func @transform_4(%arg0: i32, %arg1: i32) -> (i32, i32) {
    %c0_i32 = arith.constant 0 : i32
    %c0_i32_0 = arith.constant 0 : i32
    return %arg0, %c0_i32 : i32, i32
  }
}

module attributes {stable_mosaic.version = 11 : i64} {
  func.func @_bpr_kernel(%arg0: i32, %arg1: memref<8x128xf32, #tpu.memory_space<vmem>>, %arg2: memref<8x128xf32, #tpu.memory_space<vmem>>, %arg3: memref<2x8x128xf32, #tpu.memory_space<vmem>>, %arg4: memref<8x128xf32, #tpu.memory_space<vmem>>, %arg5: memref<8x128xf32, #tpu.memory_space<vmem>>, %arg6: memref<2x8x128xf32, #tpu.memory_space<vmem>>, %arg7: memref<1x1x1xf32, #tpu.memory_space<vmem>>, %arg8: memref<1x1x1xf32, #tpu.memory_space<vmem>>) attributes {dimension_semantics = [#tpu.dimension_semantics<parallel>], iteration_bounds = array<i64: 1>, scalar_prefetch = 0 : i64, scratch_operands = 0 : i64, tpu.core_type = #tpu.core_type<tc>, window_params = [{transform_indices = @transform_0, window_bounds = array<i64: 8, 128>}, {transform_indices = @transform_1, window_bounds = array<i64: 8, 128>}, {transform_indices = @transform_2, window_bounds = array<i64: 2, 8, 128>}, {transform_indices = @transform_3, window_bounds = array<i64: 8, 128>}, {transform_indices = @transform_4, window_bounds = array<i64: 8, 128>}, {transform_indices = @transform_5, window_bounds = array<i64: 2, 8, 128>}, {transform_indices = @transform_6, window_bounds = array<i64: 1, 1, 1>}, {transform_indices = @transform_7, window_bounds = array<i64: 1, 1, 1>}]} {
    %c0 = arith.constant 0 : index
    %c0_0 = arith.constant 0 : index
    %0 = vector.load %arg1[%c0, %c0_0] : memref<8x128xf32, #tpu.memory_space<vmem>>, vector<8x128xf32>
    %c0_1 = arith.constant 0 : index
    %c0_2 = arith.constant 0 : index
    %1 = vector.load %arg2[%c0_1, %c0_2] : memref<8x128xf32, #tpu.memory_space<vmem>>, vector<8x128xf32>
    %2 = arith.mulf %0, %1 : vector<8x128xf32>
    %cst = arith.constant dense<0.000000e+00> : vector<8xf32>
    %3 = vector.multi_reduction <add>, %2, %cst [1] : vector<8x128xf32> to vector<8xf32>
    %4 = vector.shape_cast %3 : vector<8xf32> to vector<8x1xf32>
    %cst_3 = arith.constant 0.000000e+00 : f32
    %5 = vector.broadcast %cst_3 : f32 to vector<8x1xf32>
    %c0_4 = arith.constant 0 : index
    %c0_5 = arith.constant 0 : index
    %6 = vector.load %arg4[%c0_4, %c0_5] : memref<8x128xf32, #tpu.memory_space<vmem>>, vector<8x128xf32>
    %c0_6 = arith.constant 0 : index
    %c0_7 = arith.constant 0 : index
    %7 = vector.load %arg4[%c0_6, %c0_7] : memref<8x128xf32, #tpu.memory_space<vmem>>, vector<8x128xf32>
    %8 = arith.mulf %6, %7 : vector<8x128xf32>
    %cst_8 = arith.constant dense<0.000000e+00> : vector<8xf32>
    %9 = vector.multi_reduction <add>, %8, %cst_8 [1] : vector<8x128xf32> to vector<8xf32>
    %10 = vector.shape_cast %9 : vector<8xf32> to vector<8x1xf32>
    %c0_9 = arith.constant 0 : index
    %c0_10 = arith.constant 0 : index
    %11 = vector.load %arg5[%c0_9, %c0_10] : memref<8x128xf32, #tpu.memory_space<vmem>>, vector<8x128xf32>
    %c0_11 = arith.constant 0 : index
    %c0_12 = arith.constant 0 : index
    %12 = vector.load %arg5[%c0_11, %c0_12] : memref<8x128xf32, #tpu.memory_space<vmem>>, vector<8x128xf32>
    %13 = arith.mulf %11, %12 : vector<8x128xf32>
    %cst_13 = arith.constant dense<0.000000e+00> : vector<8xf32>
    %14 = vector.multi_reduction <add>, %13, %cst_13 [1] : vector<8x128xf32> to vector<8xf32>
    %15 = vector.shape_cast %14 : vector<8xf32> to vector<8x1xf32>
    %16 = arith.addf %10, %15 : vector<8x1xf32>
    %c0_14 = arith.constant 0 : index
    %c0_15 = arith.constant 0 : index
    %c0_16 = arith.constant 0 : index
    %17 = vector.load %arg3[%c0_14, %c0_15, %c0_16] : memref<2x8x128xf32, #tpu.memory_space<vmem>>, vector<1x8x128xf32>
    %18 = vector.shape_cast %17 : vector<1x8x128xf32> to vector<8x128xf32>
    %19 = arith.mulf %0, %18 : vector<8x128xf32>
    %cst_17 = arith.constant dense<0.000000e+00> : vector<8xf32>
    %20 = vector.multi_reduction <add>, %19, %cst_17 [1] : vector<8x128xf32> to vector<8xf32>
    %21 = vector.shape_cast %20 : vector<8xf32> to vector<8x1xf32>
    %22 = arith.subf %21, %4 : vector<8x1xf32>
    %23 = math.exp %22 : vector<8x1xf32>
    %24 = arith.addf %5, %23 : vector<8x1xf32>
    %c0_18 = arith.constant 0 : index
    %c0_19 = arith.constant 0 : index
    %c0_20 = arith.constant 0 : index
    %25 = vector.load %arg6[%c0_18, %c0_19, %c0_20] : memref<2x8x128xf32, #tpu.memory_space<vmem>>, vector<1x8x128xf32>
    %26 = vector.shape_cast %25 : vector<1x8x128xf32> to vector<8x128xf32>
    %27 = arith.mulf %26, %26 : vector<8x128xf32>
    %cst_21 = arith.constant dense<0.000000e+00> : vector<8xf32>
    %28 = vector.multi_reduction <add>, %27, %cst_21 [1] : vector<8x128xf32> to vector<8xf32>
    %29 = vector.shape_cast %28 : vector<8xf32> to vector<8x1xf32>
    %30 = arith.addf %16, %29 : vector<8x1xf32>
    %c1 = arith.constant 1 : index
    %c0_22 = arith.constant 0 : index
    %c0_23 = arith.constant 0 : index
    %31 = vector.load %arg3[%c1, %c0_22, %c0_23] : memref<2x8x128xf32, #tpu.memory_space<vmem>>, vector<1x8x128xf32>
    %32 = vector.shape_cast %31 : vector<1x8x128xf32> to vector<8x128xf32>
    %33 = arith.mulf %0, %32 : vector<8x128xf32>
    %cst_24 = arith.constant dense<0.000000e+00> : vector<8xf32>
    %34 = vector.multi_reduction <add>, %33, %cst_24 [1] : vector<8x128xf32> to vector<8xf32>
    %35 = vector.shape_cast %34 : vector<8xf32> to vector<8x1xf32>
    %36 = arith.subf %35, %4 : vector<8x1xf32>
    %37 = math.exp %36 : vector<8x1xf32>
    %38 = arith.addf %24, %37 : vector<8x1xf32>
    %c1_25 = arith.constant 1 : index
    %c0_26 = arith.constant 0 : index
    %c0_27 = arith.constant 0 : index
    %39 = vector.load %arg6[%c1_25, %c0_26, %c0_27] : memref<2x8x128xf32, #tpu.memory_space<vmem>>, vector<1x8x128xf32>
    %40 = vector.shape_cast %39 : vector<1x8x128xf32> to vector<8x128xf32>
    %41 = arith.mulf %40, %40 : vector<8x128xf32>
    %cst_28 = arith.constant dense<0.000000e+00> : vector<8xf32>
    %42 = vector.multi_reduction <add>, %41, %cst_28 [1] : vector<8x128xf32> to vector<8xf32>
    %43 = vector.shape_cast %42 : vector<8xf32> to vector<8x1xf32>
    %44 = arith.addf %30, %43 : vector<8x1xf32>
    %cst_29 = arith.constant 1.000000e+00 : f32
    %45 = vector.broadcast %cst_29 : f32 to vector<8x1xf32>
    %46 = arith.addf %45, %38 : vector<8x1xf32>
    %47 = math.log %46 : vector<8x1xf32>
    %48 = vector.shape_cast %47 : vector<8x1xf32> to vector<1x8x1xf32>
    %cst_30 = arith.constant dense<0.000000e+00> : vector<1xf32>
    %49 = vector.multi_reduction <add>, %48, %cst_30 [1, 2] : vector<1x8x1xf32> to vector<1xf32>
    %50 = vector.shape_cast %49 : vector<1xf32> to vector<1x1x1xf32>
    %51 = vector.extract %50[0, 0, 0] : f32 from vector<1x1x1xf32>
    %52 = vector.broadcast %51 : f32 to vector<1x1x1xf32>
    %c0_31 = arith.constant 0 : index
    %c0_32 = arith.constant 0 : index
    %c0_33 = arith.constant 0 : index
    %53 = vector.load %arg7[%c0_31, %c0_32, %c0_33] : memref<1x1x1xf32, #tpu.memory_space<vmem>>, vector<1x1x1xf32>
    tpu.vector_store %arg7[%c0_31, %c0_32, %c0_33], %52 {strides = array<i32>} : memref<1x1x1xf32, #tpu.memory_space<vmem>>, vector<1x1x1xf32>,
    %54 = vector.shape_cast %44 : vector<8x1xf32> to vector<1x8x1xf32>
    %cst_34 = arith.constant dense<0.000000e+00> : vector<1xf32>
    %55 = vector.multi_reduction <add>, %54, %cst_34 [1, 2] : vector<1x8x1xf32> to vector<1xf32>
    %56 = vector.shape_cast %55 : vector<1xf32> to vector<1x1x1xf32>
    %57 = vector.extract %56[0, 0, 0] : f32 from vector<1x1x1xf32>
    %58 = vector.broadcast %57 : f32 to vector<1x1x1xf32>
    %c0_35 = arith.constant 0 : index
    %c0_36 = arith.constant 0 : index
    %c0_37 = arith.constant 0 : index
    %59 = vector.load %arg8[%c0_35, %c0_36, %c0_37] : memref<1x1x1xf32, #tpu.memory_space<vmem>>, vector<1x1x1xf32>
    tpu.vector_store %arg8[%c0_35, %c0_36, %c0_37], %58 {strides = array<i32>} : memref<1x1x1xf32, #tpu.memory_space<vmem>>, vector<1x1x1xf32>,
    return
  }
  func.func @transform_0(%arg0: i32) -> (i32, i32) {
    %c0_i32 = arith.constant 0 : i32
    %c0_i32_0 = arith.constant 0 : i32
    return %arg0, %c0_i32 : i32, i32
  }
  func.func @transform_1(%arg0: i32) -> (i32, i32) {
    %c0_i32 = arith.constant 0 : i32
    %c0_i32_0 = arith.constant 0 : i32
    return %arg0, %c0_i32 : i32, i32
  }
  func.func @transform_2(%arg0: i32) -> (i32, i32, i32) {
    %c0_i32 = arith.constant 0 : i32
    %c0_i32_0 = arith.constant 0 : i32
    %c0_i32_1 = arith.constant 0 : i32
    return %c0_i32, %arg0, %c0_i32_0 : i32, i32, i32
  }
  func.func @transform_3(%arg0: i32) -> (i32, i32) {
    %c0_i32 = arith.constant 0 : i32
    %c0_i32_0 = arith.constant 0 : i32
    return %arg0, %c0_i32 : i32, i32
  }
  func.func @transform_4(%arg0: i32) -> (i32, i32) {
    %c0_i32 = arith.constant 0 : i32
    %c0_i32_0 = arith.constant 0 : i32
    return %arg0, %c0_i32 : i32, i32
  }
  func.func @transform_5(%arg0: i32) -> (i32, i32, i32) {
    %c0_i32 = arith.constant 0 : i32
    %c0_i32_0 = arith.constant 0 : i32
    %c0_i32_1 = arith.constant 0 : i32
    return %c0_i32, %arg0, %c0_i32_0 : i32, i32, i32
  }
  func.func @transform_6(%arg0: i32) -> (i32, i32, i32) {
    %c0_i32 = arith.constant 0 : i32
    %c0_i32_0 = arith.constant 0 : i32
    %c0_i32_1 = arith.constant 0 : i32
    return %arg0, %c0_i32, %c0_i32_0 : i32, i32, i32
  }
  func.func @transform_7(%arg0: i32) -> (i32, i32, i32) {
    %c0_i32 = arith.constant 0 : i32
    %c0_i32_0 = arith.constant 0 : i32
    %c0_i32_1 = arith.constant 0 : i32
    return %arg0, %c0_i32, %c0_i32_0 : i32, i32, i32
  }
}

</mosaic_0001>

<bundles_post_ra>
// kernel: lightgcn_forward.5
= control target key start
LH: loop header
LB: loop body
LE: loop exit
PB: predicated region body
PF: predicated region fallthrough
CT: control target
= control target key end

     0   :  { %13 = vsyncpa [#allocation3], 0  ;;  %s286_s0 = inlined_call_operand.vmem [shape: f32[8,128], index: 0, kind: input, shape index: {}]   ;;  %s287_s1 = inlined_call_operand.vmem [shape: f32[8,128], index: 1, kind: input, shape index: {}]   ;;  %s288_s2 = inlined_call_operand.vmem [shape: f32[2,8,128], index: 2, kind: input, shape index: {}]   ;;  %s289_s3 = inlined_call_operand.vmem [shape: f32[8,128], index: 3, kind: input, shape index: {}]   ;;  %s290_s4 = inlined_call_operand.vmem [shape: f32[8,128], index: 4, kind: input, shape index: {}]   ;;  %s291_s5 = inlined_call_operand.vmem [shape: f32[2,8,128], index: 5, kind: input, shape index: {}]   ;;  %s292_s6 = inlined_call_operand.hbm [shape: f32[1,1,1], index: 6, kind: output, shape index: {0}]   ;;  %s293_s7 = inlined_call_operand.hbm [shape: f32[1,1,1], index: 7, kind: output, shape index: {1}]  }
   0x1   :  { %v27_v0 = vld [vmem:[%s286_s0] sm:$0xff]  ;;  %v126_v1 = vld [vmem:[%s288_s2 + $0x8] sm:$0xff] }
   0x2   :  { %v28_v2 = vld [vmem:[%s287_s1] sm:$0xff]  ;;  %v56_v3 = vmul.f32 %v126_v1, %v27_v0 }
   0x3   :  { %v29_v4 = vmul.f32 %v28_v2, %v27_v0  ;;  %v41_v5 = vld [vmem:[%s288_s2] sm:$0xff] }
   0x4   :  { %v32_v6 = vld [vmem:[%s289_s3] sm:$0xff] }
   0x5   :  { %14 = vsyncpa [#allocation5], 0  ;;  %57 = vadd.xlane.f32.xlu1 %v56_v3  ;;  %30 = vadd.xlane.f32.xlu0 %v29_v4  ;;  %v42_v7 = vmul.f32 %v41_v5, %v27_v0  ;;  %v33_v8 = vmul.f32 %v32_v6, %v32_v6  ;;  %v36_v9 = vld [vmem:[%s290_s4] sm:$0xff]  ;;  %v127_v13 = vld [vmem:[%s291_s5 + $0x8] sm:$0xff]  ;;  %vm72_vm0 = vcmask 7168   ;;  %s188_s3 = smov [#allocation2]  }
   0x6   :  { %v49_v10 = vld [vmem:[%s291_s5] sm:$0xff]  ;;  %v37_v11 = vmul.f32 %v36_v9, %v36_v9  ;;  %v65_v14 = vmul.f32 %v127_v13, %v127_v13  ;;  %s104_s4 = sshll.u32 %s188_s3, 4  ;;  %s189_s5 = smov [#allocation4]   ;;  %vm84_vm1 = vcmask 0   ;;  %s105_s4 = int_to_ptr.vmem [resolvable:$true] %s104_s4 }
   0x7   :  { %v50_v12 = vmul.f32 %v49_v10, %v49_v10  ;;  %s114_s14 = sshll.u32 %s189_s5, 4  ;;  %s140_s17 = scalar_lea.vmem %s105_s4, 16  ;;  %s254_s14 = int_to_ptr.vmem [resolvable:$true] %s114_s14 }
   0x8   :  { %p141_p0 = scmp.ne.s32.totalorder %s105_s4, %s140_s17  ;;  %s144_s18 = scalar_lea.vmem %s105_s4, 32 }
   0x9   :  { %43 = vadd.xlane.f32.xlu0 %v42_v7  ;;  %34 = vadd.xlane.f32.xlu1 %v33_v8  ;;  %p145_p1 = scmp.lt.s32.totalorder %s105_s4, %s105_s4  ;;  %p146_p2 = scmp.lt.s32.totalorder %s144_s18, %s140_s17 }
   0xb   :  { %p147_p3 = por %p146_p2, %p145_p1 }
   0xd   :  { %38 = vadd.xlane.f32.xlu0 %v37_v11  ;;  %51 = vadd.xlane.f32.xlu1 %v50_v12  ;;  %p148_p4 = pnand %p147_p3, %p141_p0 }
  0x11   :  { %66 = vadd.xlane.f32.xlu0 %v65_v14 }
  0x92   :  { %v58_v15 = vpop.xlane.xlu1 %57  ;;  %v31_v16 = vpop.xlane.xlu0 %30 }
  0x93   :  { %v59_v17 = vsub.f32 %v58_v15, %v31_v16 }
  0x95   :  { %v60_v18 = vmul.f32 1.442695, %v59_v17 }
  0x96   :  { %v44_v19 = vpop.xlane.xlu0 %43  ;;  %v35_v20 = vpop.xlane.xlu1 %34 }
  0x97   :  { %v45_v21 = vsub.f32 %v44_v19, %v31_v16  ;;  %134 = vpow2.f32 %v60_v18 }
  0x99   :  { %v46_v22 = vmul.f32 1.442695, %v45_v21 }
  0x9a   :  { %v39_v23 = vpop.xlane.xlu0 %38  ;;  %v52_v24 = vpop.xlane.xlu1 %51 }
  0x9b   :  { %136 = vpow2.f32 %v46_v22  ;;  %v40_v25 = vadd.f32 %v39_v23, %v35_v20 }
  0x9d   :  { %v53_v26 = vadd.f32 %v52_v24, %v40_v25 }
  0x9e   :  { %v67_v27 = vpop.xlane.xlu0 %66 }
  0x9f   :  { %v68_v28 = vadd.f32 %v67_v27, %v53_v26 }
  0xa1   :  { %v86_v29 = vsel %vm72_vm0, %v68_v28, 0.0  ;;  %v135_v30 = vpop.eup %134 }
  0xa2   :  { %87 = vadd.xlane.f32.xlu0 %v86_v29 }
  0xa5   :  { %v137_v31 = vpop.eup %136 }
  0xa6   :  { %v62_v32 = vadd.f32 %v137_v31, %v135_v30 }
  0xa8   :  { %v69_v33 = vadd.f32 1.0, %v62_v32 }
  0xaa   :  { %138 = vlog2.f32 %v69_v33 }
  0xb4   :  { %v139_v34 = vpop.eup %138 }
  0xb5   :  { %v71_v35 = vmul.f32 0.6931472, %v139_v34 }
  0xb7   :  { %v73_v36 = vsel %vm72_vm0, %v71_v35, 0.0 }
  0xb8   :  { %74 = vadd.xlane.f32.xlu1 %v73_v36 }
 0x12f   :  { %v88_v37 = vpop.xlane.xlu0 %87 }
 0x130   :  { %v89_v38 = vrot.slane %v88_v37, 4 }
 0x132   :  { %v90_v39 = vadd.f32 %v89_v38, %v88_v37 }
 0x134   :  { %v91_v40 = vrot.slane %v90_v39, 2 }
 0x136   :  { %v92_v44 = vadd.f32 %v91_v40, %v90_v39 }
 0x138   :  { %v93_v47 = vrot.slane %v92_v44, 1 }
 0x13a   :  { %v94_v50 = vadd.f32 %v93_v47, %v92_v44 }
 0x145   :  { %v75_v41 = vpop.xlane.xlu1 %74 }
 0x146   :  { %v76_v42 = vrot.slane %v75_v41, 4 }
 0x148   :  { %v77_v43 = vadd.f32 %v76_v42, %v75_v41 }
 0x14a   :  { %v78_v45 = vrot.slane %v77_v43, 2 }
 0x14c   :  { %v79_v46 = vadd.f32 %v78_v45, %v77_v43 }
 0x14e   :  { %v80_v48 = vrot.slane %v79_v46, 1 }
 0x150   :  { %v81_v49 = vadd.f32 %v80_v48, %v79_v46 }
 0x152   :  { %128 = vpush %v81_v49 }
 0x153   :  { %130 = vpush %v94_v50 }
 0x183   :  { %s129_s15 = spop %128 }
 0x184   :  { %v83_v51 = vstv %s129_s15  ;;  %s131_s16 = spop %130 }
 0x185   :  { %v96_v52 = vstv %s131_s16  ;;  %85 = vst.msk [vmem:[#allocation2] sm:$0x1] %vm84_vm1, %v83_v51 }
 0x186   :  { %97 = vst.msk [vmem:[#allocation4] sm:$0x1] %vm84_vm1, %v96_v52 }
 0x187   :  { %151 = shalt.err (!%p148_p4)
}
 0x188   :  { %s152_s21 = scalar_lea.hbm %s292_s6, 16 }
 0x189   :  { %p153_p5 = scmp.ne.s32.totalorder %s292_s6, %s152_s21  ;;  %p156_p6 = scmp.lt.u32.totalorder %s152_s21, %s292_s6 }
 0x18b   :  { %p158_p7 = pnand %p156_p6, %p153_p5 }
 0x18d   :  { %161 = shalt.err (!%p158_p7)
}
 0x18e   :  { %107 = dma.vmem_to_hbm [thread:$0]  %s105_s4, 16, %s292_s6, [#allocation3]  }
 0x18f   :  { %s162_s28 = scalar_lea.vmem %s254_s14, 16  ;;  %s166_s29 = scalar_lea.vmem %s254_s14, 32 }
 0x190   :  { %p163_p8 = scmp.ne.s32.totalorder %s254_s14, %s162_s28  ;;  %p167_p9 = scmp.lt.s32.totalorder %s254_s14, %s254_s14 }
 0x191   :  { %p168_p10 = scmp.lt.s32.totalorder %s166_s29, %s162_s28 }
 0x193   :  { %p169_p11 = por %p168_p10, %p167_p9 }
 0x195   :  { %p170_p12 = pnand %p169_p11, %p163_p8 }
 0x197   :  { %173 = shalt.err (!%p170_p12)
}
 0x198   :  { %s174_s9 = scalar_lea.hbm %s293_s7, 16 }
 0x199   :  { %p175_p13 = scmp.ne.s32.totalorder %s293_s7, %s174_s9  ;;  %p178_p0 = scmp.lt.u32.totalorder %s174_s9, %s293_s7 }
 0x19b   :  { %p180_p1 = pnand %p178_p0, %p175_p13 }
 0x19d   :  { %183 = shalt.err (!%p180_p1)
}
 0x19e   :  { %117 = dma.vmem_to_hbm [thread:$0]  %s254_s14, 16, %s293_s7, [#allocation5]  }
 0x19f   :  { %184 = dma.done.wait [#allocation3], 16  }
 0x1a0   :  { %185 = vsyncadd [#allocation3], 4294967280 }
 0x1a1   :  { %186 = dma.done.wait [#allocation5], 16  }
 0x1a2   :  { %187 = vsyncadd [#allocation5], 4294967280 }
 0x1a3   :  { %124 = vsyncpa [#allocation3], 1 }
 0x1a4   :  { %125 = vsyncpa [#allocation5], 1 }

// kernel: lightgcn_forward.4
= control target key start
LH: loop header
LB: loop body
LE: loop exit
PB: predicated region body
PF: predicated region fallthrough
CT: control target
= control target key end

     0   :  { %s894_s0 = inlined_call_operand.vmem [shape: bf16[128,128], index: 0, kind: input, shape index: {}]   ;;  %s895_s1 = inlined_call_operand.vmem [shape: bf16[128,128], index: 1, kind: input, shape index: {}]   ;;  %s896_s2 = inlined_call_operand.vmem [shape: f32[128,128], index: 2, kind: input, shape index: {}]   ;;  %s897_s3 = inlined_call_operand.hbm [shape: bf16[128,128], index: 3, kind: output, shape index: {0}]   ;;  %s898_s4 = inlined_call_operand.vmem [shape: f32[128,128], index: 4, kind: output, shape index: {1}]  }
   0x1   :  { %v663_v0 = vld [vmem:[%s895_s1] sm:$0xff]   ;;  %v664_v1 = vld [vmem:[%s895_s1 + $0x8] sm:$0xff]   ;;  %v665_v2 = vld [vmem:[%s895_s1 + $0x10] sm:$0xff]  }
   0x2   :  { %612 = vmatprep.subr.bf16.mxu0 %v663_v0  ;;  %644 = vmatprep.subr.bf16.mxu1 %v663_v0  ;;  %v666_v3 = vld [vmem:[%s895_s1 + $0x18] sm:$0xff]   ;;  %v671_v4 = vld [vmem:[%s894_s0] sm:$0xff]   ;;  %v668_v7 = vld [vmem:[%s895_s1 + $0x28] sm:$0xff]  }
   0x3   :  { %613 = vmatpush3.bf16.msra.mxu0 %v663_v0  ;;  %652 = vmatpush3.bf16.msra.mxu1 %v663_v0  ;;  %v672_v5 = vld [vmem:[%s894_s0 + $0x20] sm:$0xff]  }
   0x4   :  { %614 = vmatprep.subr.bf16.mxu0 %v664_v1  ;;  %645 = vmatprep.subr.bf16.mxu1 %v664_v1  ;;  %v667_v6 = vld [vmem:[%s895_s1 + $0x20] sm:$0xff]  }
   0x5   :  { %628 = vmatprep.mubr.bf16.mxu0 %v671_v4  ;;  %636 = vmatprep.mubr.bf16.mxu1 %v672_v5 }
   0x7   :  { %615 = vmatpush3.bf16.msra.mxu0 %v664_v1  ;;  %653 = vmatpush3.bf16.msra.mxu1 %v664_v1 }
   0x8   :  { %616 = vmatprep.subr.bf16.mxu0 %v665_v2  ;;  %646 = vmatprep.subr.bf16.mxu1 %v665_v2 }
   0xb   :  { %617 = vmatpush3.bf16.msra.mxu0 %v665_v2  ;;  %654 = vmatpush3.bf16.msra.mxu1 %v665_v2 }
   0xc   :  { %618 = vmatprep.subr.bf16.mxu0 %v666_v3  ;;  %647 = vmatprep.subr.bf16.mxu1 %v666_v3 }
   0xf   :  { %619 = vmatpush3.bf16.msra.mxu0 %v666_v3  ;;  %655 = vmatpush3.bf16.msra.mxu1 %v666_v3 }
  0x10   :  { %620 = vmatprep.subr.bf16.mxu0 %v667_v6  ;;  %648 = vmatprep.subr.bf16.mxu1 %v667_v6 }
  0x11   :  { %10 = vsyncpa [#allocation4], 0  ;;  %v669_v8 = vld [vmem:[%s895_s1 + $0x30] sm:$0xff]   ;;  %v670_v9 = vld [vmem:[%s895_s1 + $0x38] sm:$0xff]   ;;  %s703_s9 = smov [#allocation3]  }
  0x12   :  { %v673_v10 = vld [vmem:[%s894_s0 + $0x8] sm:$0xff]   ;;  %v675_v12 = vld [vmem:[%s894_s0 + $0x10] sm:$0xff]   ;;  %v677_v14 = vld [vmem:[%s894_s0 + $0x18] sm:$0xff]   ;;  %s484_s10 = sshll.u32 %s703_s9, 4  ;;  %s857_s10 = int_to_ptr.vmem [resolvable:$true] %s484_s10 }
  0x13   :  { %621 = vmatpush3.bf16.msra.mxu0 %v667_v6  ;;  %656 = vmatpush3.bf16.msra.mxu1 %v667_v6  ;;  %v674_v11 = vld [vmem:[%s894_s0 + $0x28] sm:$0xff]   ;;  %v676_v13 = vld [vmem:[%s894_s0 + $0x30] sm:$0xff]   ;;  %v678_v15 = vld [vmem:[%s894_s0 + $0x38] sm:$0xff]   ;;  %s679_s28 = scalar_lea.vmem %s857_s10, 1024  ;;  %p684_p1 = scmp.lt.s32.totalorder %s857_s10, %s857_s10 }
  0x14   :  { %622 = vmatprep.subr.bf16.mxu0 %v668_v7  ;;  %649 = vmatprep.subr.bf16.mxu1 %v668_v7  ;;  %v417_v16 = vld [vmem:[%s896_s2 + $0x10] sm:$0xff]  ;;  %v415_v18 = vld [vmem:[%s896_s2] sm:$0xff]  ;;  %v418_v22 = vld [vmem:[%s896_s2 + $0x18] sm:$0xff]  ;;  %p680_p0 = scmp.ne.s32.totalorder %s857_s10, %s679_s28  ;;  %p685_p2 = scmp.lt.s32.totalorder %s679_s28, %s679_s28 }
  0x15   :  { %v425_v17 = vld [vmem:[%s896_s2 + $0x50] sm:$0xff]  ;;  %v423_v19 = vld [vmem:[%s896_s2 + $0x40] sm:$0xff]  ;;  %v426_v23 = vld [vmem:[%s896_s2 + $0x58] sm:$0xff] }
  0x16   :  { %v416_v28 = vld [vmem:[%s896_s2 + $0x8] sm:$0xff]  ;;  %v421_v44 = vld [vmem:[%s896_s2 + $0x30] sm:$0xff]  ;;  %v419_v46 = vld [vmem:[%s896_s2 + $0x20] sm:$0xff]  ;;  %p686_p3 = por %p685_p2, %p684_p1 }
  0x17   :  { %623 = vmatpush3.bf16.msra.mxu0 %v668_v7  ;;  %657 = vmatpush3.bf16.msra.mxu1 %v668_v7  ;;  %v424_v29 = vld [vmem:[%s896_s2 + $0x48] sm:$0xff]  ;;  %v429_v45 = vld [vmem:[%s896_s2 + $0x70] sm:$0xff]  ;;  %v427_v47 = vld [vmem:[%s896_s2 + $0x60] sm:$0xff] }
  0x18   :  { %624 = vmatprep.subr.bf16.mxu0 %v669_v8  ;;  %650 = vmatprep.subr.bf16.mxu1 %v669_v8  ;;  %v422_v50 = vld [vmem:[%s896_s2 + $0x38] sm:$0xff]  ;;  %v420_v56 = vld [vmem:[%s896_s2 + $0x28] sm:$0xff]  ;;  %p687_p4 = pnand %p686_p3, %p680_p0 }
  0x19   :  { %v430_v51 = vld [vmem:[%s896_s2 + $0x78] sm:$0xff]  ;;  %v428_v57 = vld [vmem:[%s896_s2 + $0x68] sm:$0xff] }
  0x1b   :  { %625 = vmatpush3.bf16.msra.mxu0 %v669_v8  ;;  %658 = vmatpush3.bf16.msra.mxu1 %v669_v8 }
  0x1c   :  { %626 = vmatprep.subr.bf16.mxu0 %v670_v9  ;;  %651 = vmatprep.subr.bf16.mxu1 %v670_v9 }
  0x1f   :  { %627 = vmatpush3.bf16.msra.mxu0 %v670_v9  ;;  %659 = vmatpush3.bf16.msra.mxu1 %v670_v9 }
  0x22   :  { %629 = vmatmul.mubr.bf16.vlgmr.msra.gmra.mrb[0].mxu0 %v673_v10  ;;  %637 = vmatmul.mubr.bf16.vlgmr.msra.gmra.mrb[0].mxu1 %v674_v11 }
  0x23   :  { %632 = vmatprep.mubr.bf16.mxu0 %v675_v12  ;;  %640 = vmatprep.mubr.bf16.mxu1 %v676_v13 }
  0x2a   :  { %633 = vmatmul.mubr.bf16.gmra.mrb[4].mxu0 %v677_v14  ;;  %641 = vmatmul.mubr.bf16.gmra.mrb[4].mxu1 %v678_v15 }
  0xf5   :  { %v630_v20 = vpop.f32.mrb[0].mxu0  ;;  %v638_v21 = vpop.f32.mrb[0].mxu1 }
  0xf6   :  { %v449_v24 = vadd.f32 %v630_v20, %v417_v16  ;;  %v457_v25 = vadd.f32 %v638_v21, %v425_v17  ;;  %v221_v26 = vpop.f32.mrb[1].mxu0  ;;  %v253_v27 = vpop.f32.mrb[1].mxu1 }
  0xf7   :  { %v447_v30 = vadd.f32 %v415_v18, %v221_v26  ;;  %v455_v31 = vadd.f32 %v423_v19, %v253_v27  ;;  %v631_v32 = vpop.f32.mrb[2].mxu0  ;;  %v639_v33 = vpop.f32.mrb[2].mxu1 }
  0xf8   :  { %465 = vst [vmem:[%s898_s4 + $0x10] sm:$0xff] %v449_v24  ;;  %473 = vst [vmem:[%s898_s4 + $0x50] sm:$0xff] %v457_v25  ;;  %v557_v34 = vpack.c.bf16 %v631_v32, %v630_v20  ;;  %v450_v35 = vadd.f32 %v631_v32, %v418_v22  ;;  %v577_v36 = vpack.c.bf16 %v639_v33, %v638_v21  ;;  %v224_v38 = vpop.f32.mrb[3].mxu0  ;;  %v256_v39 = vpop.f32.mrb[3].mxu1 }
  0xf9   :  { %v458_v37 = vadd.f32 %v639_v33, %v426_v23  ;;  %463 = vst [vmem:[%s898_s4] sm:$0xff] %v447_v30  ;;  %471 = vst [vmem:[%s898_s4 + $0x40] sm:$0xff] %v455_v31  ;;  %v552_v40 = vpack.c.bf16 %v224_v38, %v221_v26  ;;  %v448_v41 = vadd.f32 %v416_v28, %v224_v38 }
  0xfa   :  { %v572_v42 = vpack.c.bf16 %v256_v39, %v253_v27  ;;  %v456_v43 = vadd.f32 %v424_v29, %v256_v39  ;;  %589 = vst [vmem:[#allocation3 + $0x8] sm:$0xff] %v557_v34   ;;  %466 = vst [vmem:[%s898_s4 + $0x18] sm:$0xff] %v450_v35 }
  0xfb   :  { %593 = vst [vmem:[#allocation3 + $0x28] sm:$0xff] %v577_v36   ;;  %474 = vst [vmem:[%s898_s4 + $0x58] sm:$0xff] %v458_v37 }
  0xfc   :  { %553 = vst [vmem:[#allocation3] sm:$0xff] %v552_v40   ;;  %464 = vst [vmem:[%s898_s4 + $0x8] sm:$0xff] %v448_v41 }
  0xfd   :  { %592 = vst [vmem:[#allocation3 + $0x20] sm:$0xff] %v572_v42   ;;  %472 = vst [vmem:[%s898_s4 + $0x48] sm:$0xff] %v456_v43  ;;  %v634_v48 = vpop.f32.mrb[4].mxu0  ;;  %v642_v49 = vpop.f32.mrb[4].mxu1 }
  0xfe   :  { %v453_v52 = vadd.f32 %v634_v48, %v421_v44  ;;  %v461_v53 = vadd.f32 %v642_v49, %v429_v45  ;;  %v237_v54 = vpop.f32.mrb[5].mxu0  ;;  %v269_v55 = vpop.f32.mrb[5].mxu1 }
  0xff   :  { %v451_v58 = vadd.f32 %v419_v46, %v237_v54  ;;  %v459_v59 = vadd.f32 %v427_v47, %v269_v55  ;;  %v635_v60 = vpop.f32.mrb[6].mxu0  ;;  %v643_v61 = vpop.f32.mrb[6].mxu1 }
 0x100   :  { %469 = vst [vmem:[%s898_s4 + $0x30] sm:$0xff] %v453_v52  ;;  %477 = vst [vmem:[%s898_s4 + $0x70] sm:$0xff] %v461_v53  ;;  %v567_v62 = vpack.c.bf16 %v635_v60, %v634_v48  ;;  %v454_v63 = vadd.f32 %v635_v60, %v422_v50  ;;  %v587_v0 = vpack.c.bf16 %v643_v61, %v642_v49  ;;  %v240_v2 = vpop.f32.mrb[7].mxu0  ;;  %v272_v3 = vpop.f32.mrb[7].mxu1 }
 0x101   :  { %v462_v1 = vadd.f32 %v643_v61, %v430_v51  ;;  %467 = vst [vmem:[%s898_s4 + $0x20] sm:$0xff] %v451_v58  ;;  %475 = vst [vmem:[%s898_s4 + $0x60] sm:$0xff] %v459_v59  ;;  %v562_v4 = vpack.c.bf16 %v240_v2, %v237_v54  ;;  %v452_v5 = vadd.f32 %v420_v56, %v240_v2 }
 0x102   :  { %v582_v6 = vpack.c.bf16 %v272_v3, %v269_v55  ;;  %v460_v7 = vadd.f32 %v428_v57, %v272_v3  ;;  %591 = vst [vmem:[#allocation3 + $0x18] sm:$0xff] %v567_v62   ;;  %470 = vst [vmem:[%s898_s4 + $0x38] sm:$0xff] %v454_v63 }
 0x103   :  { %595 = vst [vmem:[#allocation3 + $0x38] sm:$0xff] %v587_v0   ;;  %478 = vst [vmem:[%s898_s4 + $0x78] sm:$0xff] %v462_v1 }
 0x104   :  { %590 = vst [vmem:[#allocation3 + $0x10] sm:$0xff] %v562_v4   ;;  %468 = vst [vmem:[%s898_s4 + $0x28] sm:$0xff] %v452_v5 }
 0x105   :  { %594 = vst [vmem:[#allocation3 + $0x30] sm:$0xff] %v582_v6   ;;  %476 = vst [vmem:[%s898_s4 + $0x68] sm:$0xff] %v460_v7 }
 0x106   :  { %690 = shalt.err (!%p687_p4)
}
 0x107   :  { %s691_s5 = scalar_lea.hbm %s897_s3, 1024 }
 0x108   :  { %p692_p5 = scmp.ne.s32.totalorder %s897_s3, %s691_s5  ;;  %p695_p6 = scmp.lt.u32.totalorder %s691_s5, %s897_s3 }
 0x10a   :  { %p697_p7 = pnand %p695_p6, %p692_p5 }
 0x10c   :  { %700 = shalt.err (!%p697_p7)
}
 0x10d   :  { %s704_s4 = smov 64   ;;  %s705_s11 = smov 4  }
 0x10e   :  { %490 = dma.vmem_to_hbm [thread:$0]  %s857_s10, 1024, %s897_s3, [#allocation4], %s704_s4, %s704_s4, %s705_s11  }
 0x10f   :  { %701 = dma.done.wait [#allocation4], 1024  }
 0x110   :  { %702 = vsyncadd [#allocation4], 4294966272 }
 0x111   :  { %498 = vsyncpa [#allocation4], 1 }

// kernel: lightgcn_forward.3
= control target key start
LH: loop header
LB: loop body
LE: loop exit
PB: predicated region body
PF: predicated region fallthrough
CT: control target
= control target key end

     0   :  { %s856_s1 = inlined_call_operand.vmem [shape: bf16[128,128], index: 1, kind: input, shape index: {}]   ;;  %s857_s0 = inlined_call_operand.vmem [shape: bf16[128,128], index: 0, kind: input, shape index: {}]   ;;  %s858_s2 = inlined_call_operand.vmem [shape: f32[128,128], index: 2, kind: input, shape index: {}]   ;;  %s859_s4 = inlined_call_operand.vmem [shape: f32[128,128], index: 4, kind: output, shape index: {1}]   ;;  %s860_s3 = inlined_call_operand.vmem [shape: bf16[128,128], index: 3, kind: output, shape index: {0}]  }
   0x1   :  { %v647_v0 = vld [vmem:[%s856_s1] sm:$0xff]   ;;  %v648_v1 = vld [vmem:[%s856_s1 + $0x8] sm:$0xff]   ;;  %v649_v2 = vld [vmem:[%s856_s1 + $0x10] sm:$0xff]  }
   0x2   :  { %599 = vmatprep.subr.bf16.mxu0 %v647_v0  ;;  %631 = vmatprep.subr.bf16.mxu1 %v647_v0  ;;  %v650_v3 = vld [vmem:[%s856_s1 + $0x18] sm:$0xff]   ;;  %v655_v4 = vld [vmem:[%s857_s0] sm:$0xff]   ;;  %v652_v7 = vld [vmem:[%s856_s1 + $0x28] sm:$0xff]  }
   0x3   :  { %600 = vmatpush3.bf16.msra.mxu0 %v647_v0  ;;  %639 = vmatpush3.bf16.msra.mxu1 %v647_v0  ;;  %v656_v5 = vld [vmem:[%s857_s0 + $0x20] sm:$0xff]   ;;  %v653_v8 = vld [vmem:[%s856_s1 + $0x30] sm:$0xff]   ;;  %v654_v9 = vld [vmem:[%s856_s1 + $0x38] sm:$0xff]  }
   0x4   :  { %601 = vmatprep.subr.bf16.mxu0 %v648_v1  ;;  %632 = vmatprep.subr.bf16.mxu1 %v648_v1  ;;  %v651_v6 = vld [vmem:[%s856_s1 + $0x20] sm:$0xff]   ;;  %v657_v10 = vld [vmem:[%s857_s0 + $0x8] sm:$0xff]   ;;  %v659_v12 = vld [vmem:[%s857_s0 + $0x10] sm:$0xff]  }
   0x5   :  { %615 = vmatprep.mubr.bf16.mxu0 %v655_v4  ;;  %623 = vmatprep.mubr.bf16.mxu1 %v656_v5  ;;  %v658_v11 = vld [vmem:[%s857_s0 + $0x28] sm:$0xff]   ;;  %v660_v13 = vld [vmem:[%s857_s0 + $0x30] sm:$0xff]   ;;  %v661_v14 = vld [vmem:[%s857_s0 + $0x18] sm:$0xff]  }
   0x6   :  { %v662_v15 = vld [vmem:[%s857_s0 + $0x38] sm:$0xff]   ;;  %v416_v16 = vld [vmem:[%s858_s2 + $0x10] sm:$0xff]  ;;  %v414_v18 = vld [vmem:[%s858_s2] sm:$0xff] }
   0x7   :  { %602 = vmatpush3.bf16.msra.mxu0 %v648_v1  ;;  %640 = vmatpush3.bf16.msra.mxu1 %v648_v1  ;;  %v424_v17 = vld [vmem:[%s858_s2 + $0x50] sm:$0xff]  ;;  %v422_v19 = vld [vmem:[%s858_s2 + $0x40] sm:$0xff]  ;;  %v417_v22 = vld [vmem:[%s858_s2 + $0x18] sm:$0xff] }
   0x8   :  { %603 = vmatprep.subr.bf16.mxu0 %v649_v2  ;;  %633 = vmatprep.subr.bf16.mxu1 %v649_v2  ;;  %v425_v23 = vld [vmem:[%s858_s2 + $0x58] sm:$0xff]  ;;  %v415_v28 = vld [vmem:[%s858_s2 + $0x8] sm:$0xff]  ;;  %v420_v44 = vld [vmem:[%s858_s2 + $0x30] sm:$0xff] }
   0x9   :  { %v423_v29 = vld [vmem:[%s858_s2 + $0x48] sm:$0xff]  ;;  %v428_v45 = vld [vmem:[%s858_s2 + $0x70] sm:$0xff]  ;;  %v418_v46 = vld [vmem:[%s858_s2 + $0x20] sm:$0xff] }
   0xa   :  { %v426_v47 = vld [vmem:[%s858_s2 + $0x60] sm:$0xff]  ;;  %v421_v50 = vld [vmem:[%s858_s2 + $0x38] sm:$0xff]  ;;  %v419_v56 = vld [vmem:[%s858_s2 + $0x28] sm:$0xff] }
   0xb   :  { %604 = vmatpush3.bf16.msra.mxu0 %v649_v2  ;;  %641 = vmatpush3.bf16.msra.mxu1 %v649_v2  ;;  %v429_v51 = vld [vmem:[%s858_s2 + $0x78] sm:$0xff]  ;;  %v427_v57 = vld [vmem:[%s858_s2 + $0x68] sm:$0xff] }
   0xc   :  { %605 = vmatprep.subr.bf16.mxu0 %v650_v3  ;;  %634 = vmatprep.subr.bf16.mxu1 %v650_v3 }
   0xf   :  { %606 = vmatpush3.bf16.msra.mxu0 %v650_v3  ;;  %642 = vmatpush3.bf16.msra.mxu1 %v650_v3 }
  0x10   :  { %607 = vmatprep.subr.bf16.mxu0 %v651_v6  ;;  %635 = vmatprep.subr.bf16.mxu1 %v651_v6 }
  0x13   :  { %608 = vmatpush3.bf16.msra.mxu0 %v651_v6  ;;  %643 = vmatpush3.bf16.msra.mxu1 %v651_v6 }
  0x14   :  { %609 = vmatprep.subr.bf16.mxu0 %v652_v7  ;;  %636 = vmatprep.subr.bf16.mxu1 %v652_v7 }
  0x17   :  { %610 = vmatpush3.bf16.msra.mxu0 %v652_v7  ;;  %644 = vmatpush3.bf16.msra.mxu1 %v652_v7 }
  0x18   :  { %611 = vmatprep.subr.bf16.mxu0 %v653_v8  ;;  %637 = vmatprep.subr.bf16.mxu1 %v653_v8 }
  0x1b   :  { %612 = vmatpush3.bf16.msra.mxu0 %v653_v8  ;;  %645 = vmatpush3.bf16.msra.mxu1 %v653_v8 }
  0x1c   :  { %613 = vmatprep.subr.bf16.mxu0 %v654_v9  ;;  %638 = vmatprep.subr.bf16.mxu1 %v654_v9 }
  0x1f   :  { %614 = vmatpush3.bf16.msra.mxu0 %v654_v9  ;;  %646 = vmatpush3.bf16.msra.mxu1 %v654_v9 }
  0x22   :  { %616 = vmatmul.mubr.bf16.vlgmr.msra.gmra.mrb[0].mxu0 %v657_v10  ;;  %624 = vmatmul.mubr.bf16.vlgmr.msra.gmra.mrb[0].mxu1 %v658_v11 }
  0x23   :  { %619 = vmatprep.mubr.bf16.mxu0 %v659_v12  ;;  %627 = vmatprep.mubr.bf16.mxu1 %v660_v13 }
  0x2a   :  { %620 = vmatmul.mubr.bf16.gmra.mrb[4].mxu0 %v661_v14  ;;  %628 = vmatmul.mubr.bf16.gmra.mrb[4].mxu1 %v662_v15 }
  0xf5   :  { %v617_v20 = vpop.f32.mrb[0].mxu0  ;;  %v625_v21 = vpop.f32.mrb[0].mxu1 }
  0xf6   :  { %v448_v24 = vadd.f32 %v617_v20, %v416_v16  ;;  %v456_v25 = vadd.f32 %v625_v21, %v424_v17  ;;  %v220_v26 = vpop.f32.mrb[1].mxu0  ;;  %v252_v27 = vpop.f32.mrb[1].mxu1 }
  0xf7   :  { %v446_v30 = vadd.f32 %v414_v18, %v220_v26  ;;  %v454_v31 = vadd.f32 %v422_v19, %v252_v27  ;;  %v618_v32 = vpop.f32.mrb[2].mxu0  ;;  %v626_v33 = vpop.f32.mrb[2].mxu1 }
  0xf8   :  { %464 = vst [vmem:[%s859_s4 + $0x10] sm:$0xff] %v448_v24  ;;  %472 = vst [vmem:[%s859_s4 + $0x50] sm:$0xff] %v456_v25  ;;  %v544_v34 = vpack.c.bf16 %v618_v32, %v617_v20  ;;  %v449_v35 = vadd.f32 %v618_v32, %v417_v22  ;;  %v564_v36 = vpack.c.bf16 %v626_v33, %v625_v21  ;;  %v223_v38 = vpop.f32.mrb[3].mxu0  ;;  %v255_v39 = vpop.f32.mrb[3].mxu1 }
  0xf9   :  { %v457_v37 = vadd.f32 %v626_v33, %v425_v23  ;;  %462 = vst [vmem:[%s859_s4] sm:$0xff] %v446_v30  ;;  %470 = vst [vmem:[%s859_s4 + $0x40] sm:$0xff] %v454_v31  ;;  %v539_v40 = vpack.c.bf16 %v223_v38, %v220_v26  ;;  %v447_v41 = vadd.f32 %v415_v28, %v223_v38 }
  0xfa   :  { %v559_v42 = vpack.c.bf16 %v255_v39, %v252_v27  ;;  %v455_v43 = vadd.f32 %v423_v29, %v255_v39  ;;  %576 = vst [vmem:[%s860_s3 + $0x8] sm:$0xff] %v544_v34   ;;  %465 = vst [vmem:[%s859_s4 + $0x18] sm:$0xff] %v449_v35 }
  0xfb   :  { %580 = vst [vmem:[%s860_s3 + $0x28] sm:$0xff] %v564_v36   ;;  %473 = vst [vmem:[%s859_s4 + $0x58] sm:$0xff] %v457_v37 }
  0xfc   :  { %540 = vst [vmem:[%s860_s3] sm:$0xff] %v539_v40   ;;  %463 = vst [vmem:[%s859_s4 + $0x8] sm:$0xff] %v447_v41 }
  0xfd   :  { %579 = vst [vmem:[%s860_s3 + $0x20] sm:$0xff] %v559_v42   ;;  %471 = vst [vmem:[%s859_s4 + $0x48] sm:$0xff] %v455_v43  ;;  %v621_v48 = vpop.f32.mrb[4].mxu0  ;;  %v629_v49 = vpop.f32.mrb[4].mxu1 }
  0xfe   :  { %v452_v52 = vadd.f32 %v621_v48, %v420_v44  ;;  %v460_v53 = vadd.f32 %v629_v49, %v428_v45  ;;  %v236_v54 = vpop.f32.mrb[5].mxu0  ;;  %v268_v55 = vpop.f32.mrb[5].mxu1 }
  0xff   :  { %v450_v58 = vadd.f32 %v418_v46, %v236_v54  ;;  %v458_v59 = vadd.f32 %v426_v47, %v268_v55  ;;  %v622_v60 = vpop.f32.mrb[6].mxu0  ;;  %v630_v61 = vpop.f32.mrb[6].mxu1 }
 0x100   :  { %468 = vst [vmem:[%s859_s4 + $0x30] sm:$0xff] %v452_v52  ;;  %476 = vst [vmem:[%s859_s4 + $0x70] sm:$0xff] %v460_v53  ;;  %v554_v62 = vpack.c.bf16 %v622_v60, %v621_v48  ;;  %v453_v63 = vadd.f32 %v622_v60, %v421_v50  ;;  %v574_v0 = vpack.c.bf16 %v630_v61, %v629_v49  ;;  %v239_v2 = vpop.f32.mrb[7].mxu0  ;;  %v271_v3 = vpop.f32.mrb[7].mxu1 }
 0x101   :  { %v461_v1 = vadd.f32 %v630_v61, %v429_v51  ;;  %466 = vst [vmem:[%s859_s4 + $0x20] sm:$0xff] %v450_v58  ;;  %474 = vst [vmem:[%s859_s4 + $0x60] sm:$0xff] %v458_v59  ;;  %v549_v4 = vpack.c.bf16 %v239_v2, %v236_v54  ;;  %v451_v5 = vadd.f32 %v419_v56, %v239_v2 }
 0x102   :  { %v569_v6 = vpack.c.bf16 %v271_v3, %v268_v55  ;;  %v459_v7 = vadd.f32 %v427_v57, %v271_v3  ;;  %578 = vst [vmem:[%s860_s3 + $0x18] sm:$0xff] %v554_v62   ;;  %469 = vst [vmem:[%s859_s4 + $0x38] sm:$0xff] %v453_v63 }
 0x103   :  { %582 = vst [vmem:[%s860_s3 + $0x38] sm:$0xff] %v574_v0   ;;  %477 = vst [vmem:[%s859_s4 + $0x78] sm:$0xff] %v461_v1 }
 0x104   :  { %577 = vst [vmem:[%s860_s3 + $0x10] sm:$0xff] %v549_v4   ;;  %467 = vst [vmem:[%s859_s4 + $0x28] sm:$0xff] %v451_v5 }
 0x105   :  { %581 = vst [vmem:[%s860_s3 + $0x30] sm:$0xff] %v569_v6   ;;  %475 = vst [vmem:[%s859_s4 + $0x68] sm:$0xff] %v459_v7 }

</bundles_post_ra>
